<compile_context>
chip_gen: v7x
topology: tpu7x:2x2x1
jax: 0.10.0
libtpu: 0.0.40
codegen_flags: <defaults>
</compile_context>

<pallas_src>
import functools

import numpy as np
import jax
import jax.numpy as jnp
from jax import lax
from jax.experimental import pallas as pl
from jax.experimental.pallas import tpu as pltpu


def tree_gradient_kernel(nat_ref, slab_ref, b2_ref, out_ref, *,
                         num_nodes, seq_len, feat_dim):
    """One MXU matmul for the whole recurrence + Toeplitz Conv2, all in VMEM."""
    N, L, D = num_nodes, seq_len, feat_dim
    LD = L * D
    NP = ((N + 7) // 8) * 8          # sublane-padded row count of the N-row tables

    # Activations: [s_0 | s_1 | ... | s_{L-1}] per node, plus their sigmoids.
    nat = nat_ref[...]                                            # (N, L*D)
    lhs = jnp.concatenate([nat, jax.nn.sigmoid(nat)], axis=1)     # (N, 2*L*D)

    # Constant slab, static sublane-aligned slices (offsets are multiples of 8).
    wstack = slab_ref[0:2 * LD, :]                                # (2*L*D, D)
    xpb = slab_ref[2 * LD:2 * LD + N, :]                          # (N, D): x + folded bias
    w2t = slab_ref[2 * LD + NP:2 * LD + NP + N, :]                # (N, D): Conv2 Toeplitz^T

    # Entire L-step recurrence as ONE independent MXU matmul (no serial chain).
    h = jnp.dot(lhs, wstack, preferred_element_type=jnp.float32)  # (N, D)
    r = jnp.maximum(h + xpb, 0.0)                                 # relu(H + x + b_folded)

    # Conv2: out[i, p] = sum_d r[i, d] * w2t[p, d]  (contract over D), + scalar bias.
    out = lax.dot_general(r, w2t, (((1,), (1,)), ((), ())),
                          preferred_element_type=jnp.float32)     # (N, N)
    out_ref[...] = jax.nn.sigmoid(out + b2_ref[0, 0])             # scalar bias from SMEM


def prepare_params(w_conv, b_conv, x_param, w_conv2, b_conv2, num_nodes, seq_len):
    """Per-parameter-set precompute (run once; weights are constant across calls)."""
    D = w_conv.shape[0]
    K2 = w_conv2.shape[-1]
    N = num_nodes
    L = seq_len
    assert K2 == D - N + 1

    w0t = jnp.transpose(w_conv[:, :, 0]).astype(jnp.float32)     # right-mul matrix for s_j
    w1t = jnp.transpose(w_conv[:, :, 1]).astype(jnp.float32)     # right-mul matrix for h

    # Powers P_j = (W1^T)^j, j = 0..L-1.
    powers = [jnp.eye(D, dtype=jnp.float32)]
    for _ in range(L - 1):
        powers.append(powers[-1] @ w1t)

    # Stacked weight: rows for the raw s_j slab, then rows for the sigmoid(s_j) slab.
    a_blocks = [w0t @ powers[j] for j in range(L - 1)] + [powers[L - 1]]
    b_blocks = [powers[j] for j in range(L - 1)] + [jnp.zeros((D, D), jnp.float32)]
    wstack = jnp.concatenate(a_blocks + b_blocks, axis=0)         # (2*L*D, D)

    # Folded bias b @ sum_{j=0}^{L-2} (W1^T)^j, absorbed into the x parameter.
    psum = sum(powers[:L - 1])
    b_folded = b_conv.astype(jnp.float32) @ psum                  # (D,)
    xpb = x_param.astype(jnp.float32) + b_folded[None, :]         # (N, D)

    # Conv2 as a Toeplitz matmul, stored transposed: w2t[p, d] = w2[d - p].
    w2 = w_conv2.reshape(K2).astype(jnp.float32)
    p_idx = jnp.arange(N)[:, None]
    d_idx = jnp.arange(D)[None, :]
    diff = d_idx - p_idx                                          # (N, D)
    w2t = jnp.where((diff >= 0) & (diff < K2),
                    w2[jnp.clip(diff, 0, K2 - 1)], 0.0).astype(jnp.float32)

    # Pack every constant into one slab (keeps N-row tables sublane-aligned).
    NP = ((N + 7) // 8) * 8
    pad_rows = lambda m: jnp.pad(m, ((0, NP - N), (0, 0)))
    slab = jnp.concatenate([wstack, pad_rows(xpb), pad_rows(w2t)],
                           axis=0).astype(jnp.float32)            # (2*L*D + 2*NP, D)

    b2 = b_conv2.reshape(1, 1).astype(jnp.float32)                # SMEM scalar
    return slab, b2


@jax.jit
def tree_gradient_forward(natree, slab, b2):
    """Jitted per-call path: free contiguous reshape + single pallas_call."""
    N, L, D = natree.shape
    nat = natree.reshape(N, L * D).astype(jnp.float32)            # contiguous, no copy

    kern = functools.partial(tree_gradient_kernel,
                             num_nodes=N, seq_len=L, feat_dim=D)
    # NOTE: single grid point.  If many independent NATree batches are ever
    # processed, add a leading 'parallel' batch grid axis (amortizes launch /
    # DMA overhead and lets v7x use both TensorCores) instead of looping.
    return pl.pallas_call(
        kern,
        out_shape=jax.ShapeDtypeStruct((N, N), jnp.float32),
        in_specs=[
            pl.BlockSpec((N, L * D), lambda: (0, 0)),             # activations, lane-dense
            pl.BlockSpec(slab.shape, lambda: (0, 0)),             # packed constant slab
            pl.BlockSpec(memory_space=pltpu.MemorySpace.SMEM),    # scalar Conv2 bias
        ],
        out_specs=pl.BlockSpec((N, N), lambda: (0, 0)),
    )(nat, slab, b2)


def tree_gradient_reference(natree, w_conv, b_conv, x_param, w_conv2, b_conv2):
    """Pure-JAX reference mirroring the PyTorch forward exactly."""
    N, L, D = natree.shape
    W0 = w_conv[:, :, 0]
    W1 = w_conv[:, :, 1]
    h = natree[:, L - 1, :]
    for j in range(L - 2, -1, -1):
        s = natree[:, j, :]
        h = s @ W0.T + h @ W1.T + b_conv[None, :] + jax.nn.sigmoid(s)
    r = jnp.maximum(h + x_param, 0.0)
    K2 = w_conv2.shape[-1]
    w2 = w_conv2.reshape(K2)
    cols = [jnp.sum(r[:, p:p + K2] * w2[None, :], axis=-1) for p in range(N)]
    out = jnp.stack(cols, axis=1) + b_conv2.reshape(())
    return jax.nn.sigmoid(out)


if __name__ == "__main__":
    num_nodes = 8          # NATree.shape[0] must equal num_nodes (added to self.x)
    max_node_number = 32   # feature / channel dim D
    seq_len = 8            # NATree.shape[1]
    K2 = max_node_number - num_nodes + 1

    key = jax.random.PRNGKey(0)
    k = jax.random.split(key, 6)

    # Deterministic synthetic parameters (shapes from TreeGradient.__init__).
    natree = jax.random.normal(k[0], (num_nodes, seq_len, max_node_number), jnp.float32)
    x_param = 0.1 * jax.random.normal(k[1], (num_nodes, max_node_number), jnp.float32)
    w_conv = 0.1 * jax.random.normal(k[2], (max_node_number, max_node_number, 2), jnp.float32)
    b_conv = 0.1 * jax.random.normal(k[3], (max_node_number,), jnp.float32)
    w_conv2 = 0.1 * jax.random.normal(k[4], (1, 1, K2), jnp.float32)
    b_conv2 = 0.1 * jax.random.normal(k[5], (1,), jnp.float32)
    # TODO(synk): self.t, self.Alpha, self.fully are unused in the PyTorch
    # forward pass, so they are intentionally not instantiated here.

    slab, b2 = prepare_params(w_conv, b_conv, x_param, w_conv2, b_conv2,
                              num_nodes, seq_len)

    out = tree_gradient_forward(natree, slab, b2)
    out = jax.block_until_ready(out)

    ref = tree_gradient_reference(natree, w_conv, b_conv, x_param, w_conv2, b_conv2)
    # Tolerance slightly looser than before: the collapsed (W1^T)-power form
    # reorders the summation of the recurrence (benign at 0.1-scale weights).
    np.testing.assert_allclose(np.asarray(out), np.asarray(ref), rtol=1e-4, atol=1e-4)

    print("KERNEL_OK")
</pallas_src>

<mosaic_0001>
module attributes {stable_mosaic.version = 11 : i64} {
  func.func @tree_gradient_kernel(%arg0: memref<8x256xf32, #tpu.memory_space<vmem>>, %arg1: memref<528x32xf32, #tpu.memory_space<vmem>>, %arg2: memref<1x1xf32, #tpu.memory_space<smem>>, %arg3: memref<8x8xf32, #tpu.memory_space<vmem>>) attributes {dimension_semantics = [], scalar_prefetch = 0 : i64, scratch_operands = 0 : i64, tpu.core_type = #tpu.core_type<tc>} {
    %c0 = arith.constant 0 : index
    %c0_0 = arith.constant 0 : index
    %0 = vector.load %arg0[%c0, %c0_0] : memref<8x256xf32, #tpu.memory_space<vmem>>, vector<8x256xf32>
    %1 = arith.negf %0 : vector<8x256xf32>
    %2 = math.exp %1 : vector<8x256xf32>
    %cst = arith.constant 1.000000e+00 : f32
    %3 = vector.broadcast %cst : f32 to vector<8x256xf32>
    %4 = arith.addf %3, %2 : vector<8x256xf32>
    %5 = arith.divf %3, %4 : vector<8x256xf32>
    %6 = tpu.concatenate %0, %5 in 1 : vector<8x256xf32>, vector<8x256xf32> -> vector<8x512xf32>
    %c0_1 = arith.constant 0 : index
    %c0_2 = arith.constant 0 : index
    %7 = vector.load %arg1[%c0_1, %c0_2] : memref<528x32xf32, #tpu.memory_space<vmem>>, vector<512x32xf32>
    %c512 = arith.constant 512 : index
    %c0_3 = arith.constant 0 : index
    %8 = vector.load %arg1[%c512, %c0_3] : memref<528x32xf32, #tpu.memory_space<vmem>>, vector<8x32xf32>
    %c520 = arith.constant 520 : index
    %c0_4 = arith.constant 0 : index
    %9 = vector.load %arg1[%c520, %c0_4] : memref<528x32xf32, #tpu.memory_space<vmem>>, vector<8x32xf32>
    %cst_5 = arith.constant dense<0.000000e+00> : vector<8x32xf32>
    %10 = tpu.matmul %6, %7, %cst_5 {dimension_numbers = #tpu.dot_dimension_numbers<[1], [0], [0], [1], [0, 0, 1, 1], [], []>} : vector<8x512xf32>, vector<512x32xf32>, vector<8x32xf32> -> vector<8x32xf32>
    %11 = arith.addf %10, %8 : vector<8x32xf32>
    %cst_6 = arith.constant 0.000000e+00 : f32
    %12 = vector.broadcast %cst_6 : f32 to vector<8x32xf32>
    %13 = arith.maximumf %11, %12 : vector<8x32xf32>
    %cst_7 = arith.constant dense<0.000000e+00> : vector<8x8xf32>
    %14 = tpu.matmul %13, %9, %cst_7 {dimension_numbers = #tpu.dot_dimension_numbers<[1], [1], [0], [0], [0, 0, 1, 0], [], []>} : vector<8x32xf32>, vector<8x32xf32>, vector<8x8xf32> -> vector<8x8xf32>
    %c0_8 = arith.constant 0 : index
    %c0_9 = arith.constant 0 : index
    %15 = memref.load %arg2[%c0_8, %c0_9] : memref<1x1xf32, #tpu.memory_space<smem>>
    %16 = vector.broadcast %15 : f32 to vector<8x8xf32>
    %17 = arith.addf %14, %16 : vector<8x8xf32>
    %18 = arith.negf %17 : vector<8x8xf32>
    %19 = math.exp %18 : vector<8x8xf32>
    %cst_10 = arith.constant 1.000000e+00 : f32
    %20 = vector.broadcast %cst_10 : f32 to vector<8x8xf32>
    %21 = arith.addf %20, %19 : vector<8x8xf32>
    %22 = arith.divf %20, %21 : vector<8x8xf32>
    %c0_11 = arith.constant 0 : index
    %c0_12 = arith.constant 0 : index
    %23 = vector.load %arg3[%c0_11, %c0_12] : memref<8x8xf32, #tpu.memory_space<vmem>>, vector<8x8xf32>
    tpu.vector_store %arg3[%c0_11, %c0_12], %22 {strides = array<i32>} : memref<8x8xf32, #tpu.memory_space<vmem>>, vector<8x8xf32>,
    return
  }
}

</mosaic_0001>

<bundles_post_ra>
// kernel: tree_gradient_forward.1
= control target key start
LH: loop header
LB: loop body
LE: loop exit
PB: predicated region body
PF: predicated region fallthrough
CT: control target
= control target key end

     0   :  { %s765_s0 = inlined_call_operand.vmem [shape: f32[8,256], index: 0, kind: input, shape index: {}]   ;;  %s766_s1 = inlined_call_operand.vmem [shape: f32[528,32], index: 1, kind: input, shape index: {}]   ;;  %s767_s2 = inlined_call_operand.<no memory space> [shape: f32[1,1], index: 2, kind: input, shape index: {}]   ;;  %s768_s3 = inlined_call_operand.hbm [shape: f32[8,8], index: 3, kind: output, shape index: {}]  }
   0x1   :  { %v46_v0 = vld [vmem:[%s766_s1 + $0x80] sm:$0xff]  ;;  %v47_v1 = vld [vmem:[%s766_s1 + $0x88] sm:$0xff]  ;;  %v48_v11 = vld [vmem:[%s766_s1 + $0x90] sm:$0xff] }
   0x2   :  { %v30_v2 = vld [vmem:[%s766_s1] sm:$0xff]  ;;  %v420_v3 = vpack.c.bf16 %v47_v1, %v46_v0  ;;  %v31_v4 = vld [vmem:[%s766_s1 + $0x8] sm:$0xff]  ;;  %v49_v13 = vld [vmem:[%s766_s1 + $0x98] sm:$0xff] }
   0x3   :  { %v78_v5 = vld [vmem:[%s766_s1 + $0x180] sm:$0xff]  ;;  %v79_v6 = vld [vmem:[%s766_s1 + $0x188] sm:$0xff]  ;;  %v422_v7 = vpack.c.bf16 %v31_v4, %v30_v2  ;;  %v32_v14 = vld [vmem:[%s766_s1 + $0x10] sm:$0xff]  ;;  %v424_v16 = vpack.c.bf16 %v49_v13, %v48_v11 }
   0x4   :  { %v452_v8 = vpack.c.bf16 %v79_v6, %v78_v5  ;;  %v62_v9 = vld [vmem:[%s766_s1 + $0x100] sm:$0xff]  ;;  %v63_v10 = vld [vmem:[%s766_s1 + $0x108] sm:$0xff]  ;;  %421 = vmatprep.subr.bf16.mxu0 %v420_v3  ;;  %v33_v15 = vld [vmem:[%s766_s1 + $0x18] sm:$0xff] }
   0x5   :  { %v454_v12 = vpack.c.bf16 %v63_v10, %v62_v9  ;;  %423 = vmatpush3.bf16.msra.mxu0 %v422_v7  ;;  %v426_v17 = vpack.c.bf16 %v33_v15, %v32_v14  ;;  %v80_v18 = vld [vmem:[%s766_s1 + $0x190] sm:$0xff]  ;;  %v81_v19 = vld [vmem:[%s766_s1 + $0x198] sm:$0xff]  ;;  %v50_v23 = vld [vmem:[%s766_s1 + $0xa0] sm:$0xff] }
   0x6   :  { %453 = vmatprep.subr.bf16.mxu1 %v452_v8  ;;  %v64_v20 = vld [vmem:[%s766_s1 + $0x110] sm:$0xff]  ;;  %v456_v21 = vpack.c.bf16 %v81_v19, %v80_v18  ;;  %v65_v22 = vld [vmem:[%s766_s1 + $0x118] sm:$0xff]  ;;  %v51_v24 = vld [vmem:[%s766_s1 + $0xa8] sm:$0xff]  ;;  %425 = vmatprep.subr.bf16.mxu0 %v424_v16 }
   0x7   :  { %455 = vmatpush3.bf16.msra.mxu1 %v454_v12  ;;  %v458_v25 = vpack.c.bf16 %v65_v22, %v64_v20  ;;  %v428_v26 = vpack.c.bf16 %v51_v24, %v50_v23  ;;  %v34_v27 = vld [vmem:[%s766_s1 + $0x20] sm:$0xff]  ;;  %v35_v28 = vld [vmem:[%s766_s1 + $0x28] sm:$0xff]  ;;  %v52_v35 = vld [vmem:[%s766_s1 + $0xb0] sm:$0xff] }
   0x8   :  { %v82_v29 = vld [vmem:[%s766_s1 + $0x1a0] sm:$0xff]  ;;  %457 = vmatprep.subr.bf16.mxu1 %v456_v21  ;;  %v83_v30 = vld [vmem:[%s766_s1 + $0x1a8] sm:$0xff]  ;;  %v430_v33 = vpack.c.bf16 %v35_v28, %v34_v27  ;;  %v53_v36 = vld [vmem:[%s766_s1 + $0xb8] sm:$0xff] }
   0x9   :  { %v66_v31 = vld [vmem:[%s766_s1 + $0x120] sm:$0xff]  ;;  %v67_v32 = vld [vmem:[%s766_s1 + $0x128] sm:$0xff]  ;;  %427 = vmatpush3.bf16.msra.mxu0 %v426_v17  ;;  %v460_v34 = vpack.c.bf16 %v83_v30, %v82_v29  ;;  %v36_v37 = vld [vmem:[%s766_s1 + $0x30] sm:$0xff]  ;;  %v432_v39 = vpack.c.bf16 %v53_v36, %v52_v35 }
   0xa   :  { %429 = vmatprep.subr.bf16.mxu0 %v428_v26  ;;  %v462_v38 = vpack.c.bf16 %v67_v32, %v66_v31  ;;  %v37_v40 = vld [vmem:[%s766_s1 + $0x38] sm:$0xff]  ;;  %v84_v41 = vld [vmem:[%s766_s1 + $0x1b0] sm:$0xff]  ;;  %v54_v46 = vld [vmem:[%s766_s1 + $0xc0] sm:$0xff] }
   0xb   :  { %459 = vmatpush3.bf16.msra.mxu1 %v458_v25  ;;  %v85_v42 = vld [vmem:[%s766_s1 + $0x1b8] sm:$0xff]  ;;  %v68_v44 = vld [vmem:[%s766_s1 + $0x130] sm:$0xff]  ;;  %v55_v47 = vld [vmem:[%s766_s1 + $0xc8] sm:$0xff]  ;;  %v434_v48 = vpack.c.bf16 %v37_v40, %v36_v37 }
   0xc   :  { %461 = vmatprep.subr.bf16.mxu1 %v460_v34  ;;  %v464_v43 = vpack.c.bf16 %v85_v42, %v84_v41  ;;  %v69_v45 = vld [vmem:[%s766_s1 + $0x138] sm:$0xff]  ;;  %v86_v49 = vld [vmem:[%s766_s1 + $0x1c0] sm:$0xff]  ;;  %v87_v50 = vld [vmem:[%s766_s1 + $0x1c8] sm:$0xff]  ;;  %v436_v52 = vpack.c.bf16 %v55_v47, %v54_v46 }
   0xd   :  { %431 = vmatpush3.bf16.msra.mxu0 %v430_v33  ;;  %v466_v51 = vpack.c.bf16 %v69_v45, %v68_v44  ;;  %v38_v53 = vld [vmem:[%s766_s1 + $0x40] sm:$0xff]  ;;  %v39_v54 = vld [vmem:[%s766_s1 + $0x48] sm:$0xff]  ;;  %v468_v56 = vpack.c.bf16 %v87_v50, %v86_v49  ;;  %v56_v58 = vld [vmem:[%s766_s1 + $0xd0] sm:$0xff] }
   0xe   :  { %433 = vmatprep.subr.bf16.mxu0 %v432_v39  ;;  %v70_v55 = vld [vmem:[%s766_s1 + $0x140] sm:$0xff]  ;;  %v71_v57 = vld [vmem:[%s766_s1 + $0x148] sm:$0xff]  ;;  %v57_v59 = vld [vmem:[%s766_s1 + $0xd8] sm:$0xff]  ;;  %v438_v62 = vpack.c.bf16 %v39_v54, %v38_v53 }
   0xf   :  { %463 = vmatpush3.bf16.msra.mxu1 %v462_v38  ;;  %v88_v60 = vld [vmem:[%s766_s1 + $0x1d0] sm:$0xff]  ;;  %v89_v61 = vld [vmem:[%s766_s1 + $0x1d8] sm:$0xff]  ;;  %v470_v63 = vpack.c.bf16 %v71_v57, %v70_v55  ;;  %v440_v0 = vpack.c.bf16 %v57_v59, %v56_v58  ;;  %v58_v6 = vld [vmem:[%s766_s1 + $0xe0] sm:$0xff] }
  0x10   :  { %465 = vmatprep.subr.bf16.mxu1 %v464_v43  ;;  %v40_v1 = vld [vmem:[%s766_s1 + $0x50] sm:$0xff]  ;;  %v41_v2 = vld [vmem:[%s766_s1 + $0x58] sm:$0xff]  ;;  %v472_v4 = vpack.c.bf16 %v89_v61, %v88_v60  ;;  %v59_v7 = vld [vmem:[%s766_s1 + $0xe8] sm:$0xff] }
  0x11   :  { %435 = vmatpush3.bf16.msra.mxu0 %v434_v48  ;;  %v72_v3 = vld [vmem:[%s766_s1 + $0x150] sm:$0xff]  ;;  %v73_v5 = vld [vmem:[%s766_s1 + $0x158] sm:$0xff]  ;;  %v42_v8 = vld [vmem:[%s766_s1 + $0x60] sm:$0xff]  ;;  %v442_v12 = vpack.c.bf16 %v41_v2, %v40_v1  ;;  %v444_v17 = vpack.c.bf16 %v59_v7, %v58_v6 }
  0x12   :  { %437 = vmatprep.subr.bf16.mxu0 %v436_v52  ;;  %v43_v9 = vld [vmem:[%s766_s1 + $0x68] sm:$0xff]  ;;  %v90_v10 = vld [vmem:[%s766_s1 + $0x1e0] sm:$0xff]  ;;  %v60_v15 = vld [vmem:[%s766_s1 + $0xf0] sm:$0xff]  ;;  %v474_v16 = vpack.c.bf16 %v73_v5, %v72_v3 }
  0x13   :  { %467 = vmatpush3.bf16.msra.mxu1 %v466_v51  ;;  %v91_v11 = vld [vmem:[%s766_s1 + $0x1e8] sm:$0xff]  ;;  %v74_v13 = vld [vmem:[%s766_s1 + $0x160] sm:$0xff]  ;;  %v61_v18 = vld [vmem:[%s766_s1 + $0xf8] sm:$0xff] }
  0x14   :  { %469 = vmatprep.subr.bf16.mxu1 %v468_v56  ;;  %v75_v14 = vld [vmem:[%s766_s1 + $0x168] sm:$0xff]  ;;  %v16_v20 = vld [vmem:[%s765_s0] sm:$0xff]  ;;  %v476_v21 = vpack.c.bf16 %v91_v11, %v90_v10 }
  0x15   :  { %439 = vmatpush3.bf16.msra.mxu0 %v438_v62  ;;  %v17_v19 = vld [vmem:[%s765_s0 + $0x8] sm:$0xff]  ;;  %v338_v23 = vmul.f32 -1.442695, %v16_v20 }
  0x16   :  { %441 = vmatprep.subr.bf16.mxu0 %v440_v0  ;;  %v339_v22 = vmul.f32 -1.442695, %v17_v19  ;;  %160 = vmatprep.mubr.f32.mxu0 %v17_v19 }
  0x17   :  { %471 = vmatpush3.bf16.msra.mxu1 %v470_v63 }
  0x18   :  { %473 = vmatprep.subr.bf16.mxu1 %v472_v4 }
  0x19   :  { %9 = vsyncpa [#allocation4], 0  ;;  %v92_v24 = vld [vmem:[%s766_s1 + $0x1f0] sm:$0xff]  ;;  %v93_v25 = vld [vmem:[%s766_s1 + $0x1f8] sm:$0xff]  ;;  %443 = vmatpush3.bf16.msra.mxu0 %v442_v12  ;;  %v446_v26 = vpack.c.bf16 %v43_v9, %v42_v8  ;;  %487 = vpow2.f32 %v339_v22  ;;  %v478_v27 = vpack.c.bf16 %v75_v14, %v74_v13  ;;  %v448_v28 = vpack.c.bf16 %v61_v18, %v60_v15 }
  0x1a   :  { %445 = vmatprep.subr.bf16.mxu0 %v444_v17  ;;  %v44_v29 = vld [vmem:[%s766_s1 + $0x70] sm:$0xff]  ;;  %v45_v30 = vld [vmem:[%s766_s1 + $0x78] sm:$0xff]  ;;  %489 = vpow2.f32 %v338_v23  ;;  %v480_v31 = vpack.c.bf16 %v93_v25, %v92_v24  ;;  %v523_v42 = vmov 0.0   ;;  %v95_v43 = vld [vmem:[%s766_s1 + $0x208] sm:$0xff]  ;;  %vm239_vm0 = vcmask 261120  }
  0x1b   :  { %475 = vmatpush3.bf16.msra.mxu1 %v474_v16  ;;  %v76_v32 = vld [vmem:[%s766_s1 + $0x170] sm:$0xff]  ;;  %v77_v33 = vld [vmem:[%s766_s1 + $0x178] sm:$0xff]  ;;  %v450_v34 = vpack.c.bf16 %v45_v30, %v44_v29  ;;  %vm524_vm1 = vmmov 0   ;;  %v94_v47 = vld [vmem:[%s766_s1 + $0x200] sm:$0xff]  ;;  %v238_v54 = vstv %s767_s2  ;;  %s525_s1 = smov [#allocation3]   ;;  %vm322_vm2 = vcmask 64512  }
  0x1c   :  { %477 = vmatprep.subr.bf16.mxu1 %v476_v21  ;;  %v482_v35 = vpack.c.bf16 %v77_v33, %v76_v32  ;;  %s330_s14 = sshll.u32 %s525_s1, 4  ;;  %s331_s14 = int_to_ptr.vmem [resolvable:$true] %s330_s14 }
  0x1d   :  { %447 = vmatpush3.bf16.msra.mxu0 %v446_v26  ;;  %s499_s15 = scalar_lea.vmem %s331_s14, 128  ;;  %p504_p1 = scmp.lt.s32.totalorder %s331_s14, %s331_s14 }
  0x1e   :  { %449 = vmatprep.subr.bf16.mxu0 %v448_v28  ;;  %p500_p0 = scmp.ne.s32.totalorder %s331_s14, %s499_s15  ;;  %p505_p2 = scmp.lt.s32.totalorder %s499_s15, %s499_s15 }
  0x1f   :  { %479 = vmatpush3.bf16.msra.mxu1 %v478_v27 }
  0x20   :  { %481 = vmatprep.subr.bf16.mxu1 %v480_v31  ;;  %p506_p3 = por %p505_p2, %p504_p1 }
  0x21   :  { %451 = vmatpush3.bf16.msra.mxu0 %v450_v34 }
  0x22   :  { %415 = vmatprep.subr.mxu0 %v523_v42  ;;  %p507_p4 = pnand %p506_p3, %p500_p0 }
  0x23   :  { %483 = vmatpush3.bf16.msra.mxu1 %v482_v35  ;;  %v488_v36 = vpop.eup %487 }
  0x24   :  { %v490_v37 = vpop.eup %489  ;;  %161 = vmatmul.mubr.f32.vlgmr.msra.gmra.mrb[0].mxu0 %v16_v20  ;;  %v25_v38 = vadd.f32 1.0, %v488_v36 }
  0x25   :  { %v24_v39 = vadd.f32 1.0, %v490_v37  ;;  %417 = vmatprep.mubr.msk.f32.mxu0 %vm524_vm1, %v523_v42 }
  0x26   :  { %491 = vrcp.f32 %v25_v38 }
  0x27   :  { %493 = vrcp.f32 %v24_v39 }
  0x2a   :  { %416 = vmatpush3.xpose.msk.msra.mxu0 %vm239_vm0, %v95_v43 }
  0x30   :  { %v492_v40 = vpop.eup %491 }
  0x31   :  { %v494_v41 = vpop.eup %493  ;;  %230 = vmatprep.mubr.f32.mxu1 %v492_v40 }
  0x32   :  { %231 = vmatmul.mubr.f32.vlgmr.msra.gmra.mrb[0].mxu1 %v494_v41 }
  0xf7   :  { %v375_v44 = vpop.f32.mrb[0].mxu0 }
  0xf8   :  { %v376_v45 = vpop.f32.mrb[1].mxu0 }
  0xf9   :  { %v377_v46 = vadd.f32 %v376_v45, %v375_v44 }
  0xfb   :  { %v163_v48 = vadd.f32 %v377_v46, %v94_v47 }
 0x105   :  { %v410_v49 = vpop.f32.mrb[0].mxu1 }
 0x106   :  { %v411_v50 = vpop.f32.mrb[1].mxu1 }
 0x107   :  { %v412_v51 = vadd.f32 %v411_v50, %v410_v49 }
 0x109   :  { %v233_v52 = vadd.f32 %v412_v51, %v163_v48 }
 0x10b   :  { %v236_v53 = vmax.f32 %v233_v52, 0.0 }
 0x10d   :  { %418 = vmatmul.mubr.msk.f32.vlgmr.msra.gmra.mrb[2].mxu0 %vm239_vm0, %v236_v53 }
 0x1e0   :  { %v312_v55 = vpop.f32.mrb[2].mxu0 }
 0x1e1   :  { %v313_v56 = vadd.f32 %v312_v55, %v238_v54  ;;  %v419_v57 = vpop.f32.mrb[3].mxu0 }
 0x1e3   :  { %v342_v58 = vmul.f32 -1.442695, %v313_v56 }
 0x1e5   :  { %495 = vpow2.f32 %v342_v58 }
 0x1ef   :  { %v496_v59 = vpop.eup %495 }
 0x1f0   :  { %v319_v60 = vadd.f32 1.0, %v496_v59 }
 0x1f2   :  { %497 = vrcp.f32 %v319_v60 }
 0x1fc   :  { %v498_v61 = vpop.eup %497 }
 0x1fd   :  { %323 = vst.msk [vmem:[#allocation3] sm:$0xff] %vm322_vm2, %v498_v61 }
 0x1fe   :  { %510 = shalt.err (!%p507_p4)
}
 0x1ff   :  { %s511_s17 = scalar_lea.hbm %s768_s3, 128 }
 0x200   :  { %p512_p5 = scmp.ne.s32.totalorder %s768_s3, %s511_s17  ;;  %p515_p6 = scmp.lt.u32.totalorder %s511_s17, %s768_s3 }
 0x202   :  { %p517_p7 = pnand %p515_p6, %p512_p5 }
 0x204   :  { %520 = shalt.err (!%p517_p7)
}
 0x205   :  { %333 = dma.vmem_to_hbm [thread:$0]  %s331_s14, 128, %s768_s3, [#allocation4]  }
 0x206   :  { %521 = dma.done.wait [#allocation4], 128  }
 0x207   :  { %522 = vsyncadd [#allocation4], 4294967168 }
 0x208   :  { %337 = vsyncpa [#allocation4], 1 }

</bundles_post_ra>
